<compile_context>
chip_gen: v7x
topology: tpu7x:2x2x1
jax: 0.10.0
libtpu: 0.0.40
codegen_flags: <defaults>
</compile_context>

<pallas_src>
import math

import jax
import jax.numpy as jnp
from jax.experimental import pallas as pl
from jax.experimental.pallas import tpu as pltpu


def _round_up(x, m):
    return (x + m - 1) // m * m


def gcn_row_tile_kernel(a_ref, xw_ref, b_ref, o_ref):
    # a_ref : (TM, N)      bf16 adjacency row tile (rows = destination nodes)
    # xw_ref: (N, F_out)   bf16 resident (D_out^{-1/2} X) W
    # b_ref : (1, F_out)   f32 bias
    # o_ref : (TM, F_out)  f32 output tile
    a = a_ref[...]
    # in-degree of this tile's destination rows; 0/1 values summed in f32 -> exact
    deg_in = jnp.sum(a.astype(jnp.float32), axis=1, keepdims=True)       # (TM, 1)
    norm_in = jax.lax.rsqrt(jnp.maximum(deg_in, 1.0))                    # DGL-style clamp
    # single MXU matmul per tile, f32 accumulation
    h = jnp.dot(a, xw_ref[...], preferred_element_type=jnp.float32)      # (TM, F_out)
    y = h * norm_in + b_ref[...]
    o_ref[...] = jnp.maximum(y, 0.0)                                     # activation = ReLU


def gcn_forward(adj, feats, weight, bias, *, tm=512):
    """relu(D_in^-1/2 A D_out^-1/2 X W + b) via a row-tiled Pallas kernel."""
    n, _ = feats.shape
    f_out = weight.shape[1]
    adj = adj.astype(jnp.float32)

    # ---- tiny XLA prologue: fold D_out^{-1/2} into X and apply W once ----
    deg_out = jnp.maximum(jnp.sum(adj, axis=0), 1.0)                  # (N,) source out-degree
    xw = (feats * jax.lax.rsqrt(deg_out)[:, None]) @ weight           # (N, F_out) f32

    # ---- row tiling (pad N so the grid divides evenly; zero padding is inert:
    #      padded cols contribute 0, padded rows are sliced away) ----
    tm = _round_up(min(tm, n), 8)
    n_pad = _round_up(n, tm)
    pad = n_pad - n
    adj_p = jnp.pad(adj, ((0, pad), (0, pad))).astype(jnp.bfloat16)   # 0/1 -> bf16 lossless
    xw_p = jnp.pad(xw, ((0, pad), (0, 0))).astype(jnp.bfloat16)
    bias2d = bias.reshape(1, f_out).astype(jnp.float32)

    # raise the scoped-VMEM cap only if the tiles actually need it
    need = 2 * tm * n_pad * 2 + 2 * n_pad * f_out * 2 + 2 * tm * f_out * 4 + (1 << 20)
    cp_kwargs = dict(dimension_semantics=("parallel",))
    if need > (16 << 20):
        cp_kwargs["vmem_limit_bytes"] = int(min(2 * need, 64 << 20))

    out_p = pl.pallas_call(
        gcn_row_tile_kernel,
        out_shape=jax.ShapeDtypeStruct((n_pad, f_out), jnp.float32),
        grid_spec=pltpu.PrefetchScalarGridSpec(
            num_scalar_prefetch=0,
            grid=(n_pad // tm,),
            in_specs=[
                pl.BlockSpec((tm, n_pad), lambda i: (i, 0)),      # A row tile (streamed)
                pl.BlockSpec((n_pad, f_out), lambda i: (0, 0)),   # XW (resident)
                pl.BlockSpec((1, f_out), lambda i: (0, 0)),       # bias (resident)
            ],
            out_specs=pl.BlockSpec((tm, f_out), lambda i: (i, 0)),
        ),
        compiler_params=pltpu.CompilerParams(**cp_kwargs),
    )(adj_p, xw_p, bias2d)
    return out_p[:n]


def reference_gcn(adj, feats, weight, bias):
    deg_in = jnp.clip(adj.sum(axis=1, keepdims=True), 1.0, None)
    deg_out = jnp.clip(adj.sum(axis=0, keepdims=True), 1.0, None)
    a_norm = adj * (deg_in ** -0.5) * (deg_out ** -0.5)
    return jnp.maximum(a_norm @ feats @ weight + bias[None, :], 0.0)


if __name__ == "__main__":
    # small, non-multiple-of-tile N so the padding + multi-tile grid path is exercised
    N, F_IN, F_OUT = 200, 16, 32

    key = jax.random.PRNGKey(0)
    k_adj, k_x, k_w, k_b = jax.random.split(key, 4)

    adj = (jax.random.uniform(k_adj, (N, N)) < 0.3).astype(jnp.float32)
    feats = jax.random.normal(k_x, (N, F_IN), dtype=jnp.float32)

    limit = math.sqrt(6.0 / (F_IN + F_OUT))
    weight = jax.random.uniform(
        k_w, (F_IN, F_OUT), minval=-limit, maxval=limit, dtype=jnp.float32
    )
    bias = 0.1 * jax.random.normal(k_b, (F_OUT,), dtype=jnp.float32)

    out = gcn_forward(adj, feats, weight, bias, tm=64)   # grid = (4,)
    out = jax.block_until_ready(out)

    ref = reference_gcn(adj, feats, weight, bias)
    assert out.shape == (N, F_OUT)
    # bf16 A stream / bf16 XW with f32 accumulation -> ~1e-3 abs error at this scale
    max_err = float(jnp.max(jnp.abs(out - ref)))
    assert jnp.allclose(out, ref, atol=2e-2, rtol=2e-2), f"max abs err {max_err}"

    print("KERNEL_OK")
</pallas_src>

<mosaic_0001>
module attributes {stable_mosaic.version = 11 : i64} {
  func.func @gcn_row_tile_kernel(%arg0: i32, %arg1: memref<64x256xbf16, #tpu.memory_space<vmem>>, %arg2: memref<256x32xbf16, #tpu.memory_space<vmem>>, %arg3: memref<1x32xf32, #tpu.memory_space<vmem>>, %arg4: memref<64x32xf32, #tpu.memory_space<vmem>>) attributes {dimension_semantics = [#tpu.dimension_semantics<parallel>], iteration_bounds = array<i64: 4>, scalar_prefetch = 0 : i64, scratch_operands = 0 : i64, tpu.core_type = #tpu.core_type<tc>, window_params = [{transform_indices = @transform_0, window_bounds = array<i64: 64, 256>}, {pipeline_mode = #tpu.pipeline_mode<synchronous>, transform_indices = @transform_1, window_bounds = array<i64: 256, 32>}, {pipeline_mode = #tpu.pipeline_mode<synchronous>, transform_indices = @transform_2, window_bounds = array<i64: 1, 32>}, {transform_indices = @transform_3, window_bounds = array<i64: 64, 32>}]} {
    %c0 = arith.constant 0 : index
    %c0_0 = arith.constant 0 : index
    %0 = vector.load %arg1[%c0, %c0_0] : memref<64x256xbf16, #tpu.memory_space<vmem>>, vector<64x256xbf16>
    %1 = arith.extf %0 : vector<64x256xbf16> to vector<64x256xf32>
    %cst = arith.constant dense<0.000000e+00> : vector<64xf32>
    %2 = vector.multi_reduction <add>, %1, %cst [1] : vector<64x256xf32> to vector<64xf32>
    %3 = vector.shape_cast %2 : vector<64xf32> to vector<64x1xf32>
    %cst_1 = arith.constant 1.000000e+00 : f32
    %4 = vector.broadcast %cst_1 : f32 to vector<64x1xf32>
    %5 = arith.maximumf %3, %4 : vector<64x1xf32>
    %6 = math.rsqrt %5 : vector<64x1xf32>
    %c0_2 = arith.constant 0 : index
    %c0_3 = arith.constant 0 : index
    %7 = vector.load %arg2[%c0_2, %c0_3] : memref<256x32xbf16, #tpu.memory_space<vmem>>, vector<256x32xbf16>
    %cst_4 = arith.constant dense<0.000000e+00> : vector<64x32xf32>
    %8 = tpu.matmul %0, %7, %cst_4 {dimension_numbers = #tpu.dot_dimension_numbers<[1], [0], [0], [1], [0, 0, 1, 1], [], []>} : vector<64x256xbf16>, vector<256x32xbf16>, vector<64x32xf32> -> vector<64x32xf32>
    %9 = vector.broadcast %6 : vector<64x1xf32> to vector<64x32xf32>
    %10 = arith.mulf %8, %9 : vector<64x32xf32>
    %c0_5 = arith.constant 0 : index
    %c0_6 = arith.constant 0 : index
    %11 = vector.load %arg3[%c0_5, %c0_6] : memref<1x32xf32, #tpu.memory_space<vmem>>, vector<1x32xf32>
    %12 = vector.broadcast %11 : vector<1x32xf32> to vector<64x32xf32>
    %13 = arith.addf %10, %12 : vector<64x32xf32>
    %cst_7 = arith.constant 0.000000e+00 : f32
    %14 = vector.broadcast %cst_7 : f32 to vector<64x32xf32>
    %15 = arith.maximumf %13, %14 : vector<64x32xf32>
    %c0_8 = arith.constant 0 : index
    %c0_9 = arith.constant 0 : index
    %16 = vector.load %arg4[%c0_8, %c0_9] : memref<64x32xf32, #tpu.memory_space<vmem>>, vector<64x32xf32>
    tpu.vector_store %arg4[%c0_8, %c0_9], %15 {strides = array<i32>} : memref<64x32xf32, #tpu.memory_space<vmem>>, vector<64x32xf32>,
    return
  }
  func.func @transform_0(%arg0: i32) -> (i32, i32) {
    %c0_i32 = arith.constant 0 : i32
    %c0_i32_0 = arith.constant 0 : i32
    return %arg0, %c0_i32 : i32, i32
  }
  func.func @transform_1(%arg0: i32) -> (i32, i32) {
    %c0_i32 = arith.constant 0 : i32
    %c0_i32_0 = arith.constant 0 : i32
    %c0_i32_1 = arith.constant 0 : i32
    return %c0_i32, %c0_i32_0 : i32, i32
  }
  func.func @transform_2(%arg0: i32) -> (i32, i32) {
    %c0_i32 = arith.constant 0 : i32
    %c0_i32_0 = arith.constant 0 : i32
    %c0_i32_1 = arith.constant 0 : i32
    return %c0_i32, %c0_i32_0 : i32, i32
  }
  func.func @transform_3(%arg0: i32) -> (i32, i32) {
    %c0_i32 = arith.constant 0 : i32
    %c0_i32_0 = arith.constant 0 : i32
    return %arg0, %c0_i32 : i32, i32
  }
}

</mosaic_0001>

<bundles_post_ra>
// kernel: tpu_custom_call.1
= control target key start
LH: loop header
LB: loop body
LE: loop exit
PB: predicated region body
PF: predicated region fallthrough
CT: control target
= control target key end

     0   :  { %8 = vsyncpa [#allocation3], 0  ;;  %s1076_s0 = inlined_call_operand.hbm [shape: bf16[256,256], index: 0, kind: input, shape index: {}]   ;;  %s1077_s1 = inlined_call_operand.vmem [shape: bf16[256,32], index: 1, kind: input, shape index: {}]   ;;  %s1078_s2 = inlined_call_operand.vmem [shape: f32[1,32], index: 2, kind: input, shape index: {}]   ;;  %s1079_s3 = inlined_call_operand.vmem [shape: f32[256,32], index: 3, kind: output, shape index: {}]  }
   0x1   :  { %10 = vsyncpa [#allocation3 + $0x1], 0  ;;  %s866_s12 = smov 0   ;;  %s868_s13 = smov 0  }
   0x2   :  { %s870_s14 = smov 0   ;;  %s872_s15 = smov 0  }
   0x3 LB: > { %s599_s16 = sadd.s32 4294967295, %s841_s15   ;;  %s886_s17 = sadd.s32 1, %s841_s15   ;;  %s841_s15 = sphi %s872_s15, %s1086_s15   ;;  %s837_s14 = sphi %s870_s14, %s1085_s14   ;;  %s833_s13 = sphi %s868_s13, %s1084_s13   ;;  %s829_s12 = sphi %s866_s12, %s1083_s12  }
   0x4   : > { %s20_s18 = ssub.s32 %s841_s15, %s886_s17  ;;  %s23_s19 = sadd.s32 1, %s837_s14 }
   0x5   : > { %p21_p0 = scmp.eq.s32.totalorder %s20_s18, 0  ;;  %p30_p1 = scmp.ne.s32.totalorder %s837_s14, %s833_s13 }
   0x6   : > { %p31_p2 = scmp.eq.s32.totalorder %s841_s15, 0  ;;  %p36_p3 = scmp.ne.s32.totalorder %s833_s13, %s829_s12 }
   0x7   : > { %s896_s20 = scalar_select %p21_p0, %s837_s14, %s23_s19  }
   0x8   : > { %p32_p4 = por %p31_p2, %p30_p1  ;;  %p37_p5 = scmp.eq.s32.totalorder %s599_s16, 0 }
   0x9   : > { %p702_p6 = scmp.lt.s32.totalorder %s841_s15, 4  ;;  %s134_s22 = sand.u32 1, %s837_s14  }
   0xa   : > { %p901_p7 = por %p37_p5, %p36_p3  ;;  %s603_s23 = sshll.u32 %s134_s22, 6 }
   0xb   : > { %s639_s24 = sshll.u32 %s841_s15, 10  ;;  %s138_s28 = scalar_lea.vmem [#allocation2], %s603_s23 }
   0xc   : > { %s910_s27 = scalar_lea.hbm %s1076_s0, %s639_s24  ;;  %s146_s29 = sshll.u32 %s138_s28, 4  ;;  %s912_s29 = int_to_ptr.vmem [resolvable:$true] %s146_s29 }
   0xd   : > { %p914_p8 = pnand %p702_p6, %p32_p4  ;;  %s919_s4 = scalar_lea.sflag [#allocation3], %s134_s22 }
   0xe   : > { %s777_s5 = scalar_lea.hbm %s910_s27, 1024  ;;  %s782_s8 = scalar_lea.hbm %s1076_s0, 4096 }
   0xf   : > { %p778_p10 = scmp.ne.s32.totalorder %s910_s27, %s777_s5  ;;  %p779_p11 = pneg %p914_p8 }
  0x10   : > { %p783_p0 = scmp.lt.u32.totalorder %s910_s27, %s1076_s0  ;;  %p784_p1 = scmp.lt.u32.totalorder %s782_s8, %s777_s5 }
  0x11   : > { %p780_p12 = pnand %p779_p11, %p778_p10  ;;  %p786_p3 = scmp.lt.u32.totalorder %s777_s5, %s910_s27 }
  0x12   : > { %p785_p2 = por %p784_p1, %p783_p0 }
  0x13   : > { %p781_p13 = pneg %p780_p12 }
  0x14   : > { %p787_p4 = por %p786_p3, %p785_p2 }
  0x16   : > { %p788_p5 = pnand %p787_p4, %p781_p13 }
  0x18   : > { %791 = shalt.err (!%p788_p5)
}
  0x19   : > { %s792_s11 = scalar_lea.vmem %s912_s29, 1024  ;;  %s843_s12 = smov [#allocation2]  }
  0x1a   : > { %p793_p6 = scmp.ne.s32.totalorder %s912_s29, %s792_s11  ;;  %s797_s18 = sshll.u32 %s843_s12, 4  ;;  %s798_s18 = int_to_ptr.vmem [resolvable:$false] %s797_s18 }
  0x1b   : > { %s799_s19 = scalar_lea.vmem %s798_s18, 2048  ;;  %p800_p9 = scmp.lt.s32.totalorder %s912_s29, %s798_s18 }
  0x1c   : > { %p795_p10 = pnand %p793_p6, %p779_p11  ;;  %p801_p0 = scmp.lt.s32.totalorder %s799_s19, %s792_s11 }
  0x1e   : > { %p796_p12 = pneg %p795_p10  ;;  %p802_p1 = por %p801_p0, %p800_p9 }
  0x20   : > { %p803_p2 = pnand %p802_p1, %p796_p12 }
  0x22   : > { %806 = shalt.err (!%p803_p2)
}
  0x23   : > { %s844_s22 = smov 128   ;;  %s845_s23 = smov 8  }
  0x24   : > { %701 = dma.hbm_to_vmem [thread:$0]  (!%p914_p8), %s910_s27, 1024, %s912_s29, %s919_s4, %s844_s22, %s844_s22, %s845_s23  }
  0x25   : > { %p154_p11 = scmp.lt.s32.totalorder %s841_s15, 5  ;;  %p1082_p13 = scmp.ge.s32.totalorder %s841_s15, 1 }
  0x27   : > { %p155_p3 = pnand %p1082_p13, %p154_p11 }
  0x28   : > { %s160_s24 = sand.u32 (!%p155_p3), 1, %s833_s13  }
  0x29   : > { %158 = sbr.rel (%p155_p3) target bundleno = 315 (0x13b), region = 32  ;;  %s608_s25 = sshll.u32 (!%p155_p3), %s160_s24, 6 }
  0x2a   : > { %s161_s26 = scalar_lea.sflag (!%p155_p3), [#allocation3], %s160_s24  ;;  %s951_s28 = scalar_lea.vmem (!%p155_p3), [#allocation2], %s608_s25 }
  0x30   : > { %824 = dma.done.wait (%p901_p7), %s161_s26, 1024  }
  0x31   : > { %826 = vsyncadd (%p901_p7), %s161_s26, 4294966272  ;;  %v737_v0 = vld [vmem:[%s1077_s1 + $0x40] sm:$0xff]   ;;  %v739_v2 = vld [vmem:[%s1077_s1 + $0x48] sm:$0xff]   ;;  %vm523_vm0 = vcmask 261120  }
  0x32   : > { %v738_v1 = vld [vmem:[%s1077_s1] sm:$0xff]   ;;  %640 = vmatprep.subr.bf16.mxu0 %v737_v0  ;;  %680 = vmatprep.subr.bf16.mxu1 %v737_v0  ;;  %v740_v3 = vld [vmem:[%s1077_s1 + $0x8] sm:$0xff]   ;;  %v741_v4 = vld [vmem:[%s1077_s1 + $0x50] sm:$0xff]  }
  0x33   : > { %641 = vmatpush3.bf16.msra.mxu0 %v738_v1  ;;  %688 = vmatpush3.bf16.msra.mxu1 %v738_v1  ;;  %v742_v5 = vld [vmem:[%s1077_s1 + $0x10] sm:$0xff]   ;;  %v743_v6 = vld [vmem:[%s1077_s1 + $0x58] sm:$0xff]   ;;  %v745_v8 = vld [vmem:[%s1077_s1 + $0x60] sm:$0xff]  }
  0x34   : > { %642 = vmatprep.subr.bf16.mxu0 %v739_v2  ;;  %681 = vmatprep.subr.bf16.mxu1 %v739_v2  ;;  %v744_v7 = vld [vmem:[%s1077_s1 + $0x18] sm:$0xff]   ;;  %v746_v9 = vld [vmem:[%s1077_s1 + $0x20] sm:$0xff]   ;;  %v747_v10 = vld [vmem:[%s1077_s1 + $0x68] sm:$0xff]  }
  0x35   : > { %v991_v11 = vld [vmem:[%s951_s28] sm:$0xff]  ;;  %v994_v12 = vld [vmem:[%s951_s28 + $0x8] sm:$0xff]  ;;  %v1006_v19 = vld [vmem:[%s951_s28 + $0x10] sm:$0xff] }
  0x36   : > { %v997_v13 = vld [vmem:[%s951_s28 + $0x20] sm:$0xff]  ;;  %v612_v14 = vcombine.high %v991_v11, %v994_v12  ;;  %v200_v15 = vld [vmem:[%s951_s28 + $0x28] sm:$0xff]  ;;  %v203_v16 = vunpack.c.l.bf16 %v991_v11  ;;  %v204_v17 = vunpack.c.h.bf16 %v991_v11  ;;  %v207_v22 = vunpack.c.l.bf16 %v1006_v19  ;;  %v749_v23 = vld [vmem:[%s1077_s1 + $0x70] sm:$0xff]  }
  0x37   : > { %643 = vmatpush3.bf16.msra.mxu0 %v740_v3  ;;  %689 = vmatpush3.bf16.msra.mxu1 %v740_v3  ;;  %v616_v18 = vcombine.high %v997_v13, %v200_v15  ;;  %v748_v20 = vld [vmem:[%s1077_s1 + $0x28] sm:$0xff]   ;;  %v198_v24 = vld [vmem:[%s951_s28 + $0x18] sm:$0xff]  ;;  %v208_v25 = vunpack.c.h.bf16 %v1006_v19  ;;  %v205_v26 = vunpack.c.l.bf16 %v994_v12  ;;  %v206_v27 = vunpack.c.h.bf16 %v994_v12  ;;  %v750_v34 = vld [vmem:[%s1077_s1 + $0x30] sm:$0xff]  }
  0x38   : > { %644 = vmatprep.subr.bf16.mxu0 %v741_v4  ;;  %682 = vmatprep.subr.bf16.mxu1 %v741_v4  ;;  %v219_v21 = vadd.f32 %v204_v17, %v203_v16  ;;  %v209_v28 = vunpack.c.l.bf16 %v198_v24  ;;  %v210_v29 = vunpack.c.h.bf16 %v198_v24  ;;  %v211_v32 = vunpack.c.l.bf16 %v997_v13  ;;  %v751_v35 = vld [vmem:[%s1077_s1 + $0x78] sm:$0xff]   ;;  %v201_v41 = vld [vmem:[%s951_s28 + $0x30] sm:$0xff] }
  0x39   : > { %459 = vmatprep.mubr.bf16.mxu0 %v612_v14  ;;  %475 = vmatprep.mubr.bf16.mxu1 %v616_v18  ;;  %v225_v30 = vadd.f32 %v208_v25, %v207_v22  ;;  %v222_v31 = vadd.f32 %v206_v27, %v205_v26  ;;  %v212_v33 = vunpack.c.h.bf16 %v997_v13  ;;  %v213_v37 = vunpack.c.l.bf16 %v200_v15  ;;  %v752_v40 = vld [vmem:[%s1077_s1 + $0x38] sm:$0xff]  }
  0x3a   : > { %220 = vadd.xlane.f32.xlu0 %v219_v21  ;;  %v228_v36 = vadd.f32 %v210_v29, %v209_v28  ;;  %v214_v38 = vunpack.c.h.bf16 %v200_v15  ;;  %v202_v42 = vld [vmem:[%s951_s28 + $0x38] sm:$0xff]  ;;  %v215_v43 = vunpack.c.l.bf16 %v201_v41  ;;  %v216_v44 = vunpack.c.h.bf16 %v201_v41  ;;  %s609_s28 = sshll.u32 %s599_s16, 3 }
  0x3b   : > { %645 = vmatpush3.bf16.msra.mxu0 %v742_v5  ;;  %690 = vmatpush3.bf16.msra.mxu1 %v742_v5  ;;  %v231_v39 = vadd.f32 %v212_v33, %v211_v32  ;;  %v217_v46 = vunpack.c.l.bf16 %v202_v42  ;;  %v218_v47 = vunpack.c.h.bf16 %v202_v42  ;;  %v611_v48 = vcombine.low %v991_v11, %v994_v12  ;;  %p189_p7 = scmp.lt.s32.totalorder %s609_s28, 31 }
  0x3c   : > { %646 = vmatprep.subr.bf16.mxu0 %v743_v6  ;;  %683 = vmatprep.subr.bf16.mxu1 %v743_v6  ;;  %v234_v45 = vadd.f32 %v214_v38, %v213_v37  ;;  %v615_v49 = vcombine.low %v997_v13, %v200_v15  ;;  %v614_v50 = vcombine.high %v1006_v19, %v198_v24 }
  0x3d   : > { %226 = vadd.xlane.f32.xlu1 %v225_v30  ;;  %v618_v51 = vcombine.high %v201_v41, %v202_v42  ;;  %v237_v52 = vadd.f32 %v216_v44, %v215_v43  ;;  %v240_v53 = vadd.f32 %v218_v47, %v217_v46  ;;  %v613_v54 = vcombine.low %v1006_v19, %v198_v24  ;;  %s1088_s28 = smov (!%p189_p7, %s609_s28), 31 }
  0x3e   : > { %223 = vadd.xlane.f32.xlu0 %v222_v31  ;;  %v617_v55 = vcombine.low %v201_v41, %v202_v42  ;;  %s610_s12 = sshll.u32 %s1088_s28, 3 }
  0x3f   : > { %647 = vmatpush3.bf16.msra.mxu0 %v744_v7  ;;  %691 = vmatpush3.bf16.msra.mxu1 %v744_v7  ;;  %s1045_s22 = scalar_lea.vmem %s1079_s3, %s610_s12 }
  0x40   : > { %648 = vmatprep.subr.bf16.mxu0 %v745_v8  ;;  %684 = vmatprep.subr.bf16.mxu1 %v745_v8 }
  0x41   : > { %229 = vadd.xlane.f32.xlu1 %v228_v36 }
  0x42   : > { %232 = vadd.xlane.f32.xlu0 %v231_v39 }
  0x43   : > { %649 = vmatpush3.bf16.msra.mxu0 %v746_v9  ;;  %692 = vmatpush3.bf16.msra.mxu1 %v746_v9 }
  0x44   : > { %650 = vmatprep.subr.bf16.mxu0 %v747_v10  ;;  %685 = vmatprep.subr.bf16.mxu1 %v747_v10 }
  0x45   : > { %235 = vadd.xlane.f32.xlu1 %v234_v45 }
  0x46   : > { %238 = vadd.xlane.f32.xlu0 %v237_v52 }
  0x47   : > { %651 = vmatpush3.bf16.msra.mxu0 %v748_v20  ;;  %693 = vmatpush3.bf16.msra.mxu1 %v748_v20  ;;  %v635_v20 = vld [vmem:[%s1078_s2] ss:$0 sm:$0xff] }
  0x48   : > { %652 = vmatprep.subr.bf16.mxu0 %v749_v23  ;;  %686 = vmatprep.subr.bf16.mxu1 %v749_v23 }
  0x49   : > { %241 = vadd.xlane.f32.xlu1 %v240_v53 }
  0x4b   : > { %653 = vmatpush3.bf16.msra.mxu0 %v750_v34  ;;  %694 = vmatpush3.bf16.msra.mxu1 %v750_v34 }
  0x4c   : > { %654 = vmatprep.subr.bf16.mxu0 %v751_v35  ;;  %687 = vmatprep.subr.bf16.mxu1 %v751_v35 }
  0x4f   : > { %655 = vmatpush3.bf16.msra.mxu0 %v752_v40  ;;  %695 = vmatpush3.bf16.msra.mxu1 %v752_v40 }
  0x52   : > { %460 = vmatmul.mubr.bf16.vlgmr.msra.gmra.mrb[0].mxu0 %v611_v48  ;;  %476 = vmatmul.mubr.bf16.vlgmr.msra.gmra.mrb[0].mxu1 %v615_v49 }
  0x53   : > { %467 = vmatprep.mubr.bf16.mxu0 %v614_v50  ;;  %483 = vmatprep.mubr.bf16.mxu1 %v618_v51 }
  0x5a   : > { %468 = vmatmul.mubr.bf16.gmra.mrb[4].mxu0 %v613_v54  ;;  %484 = vmatmul.mubr.bf16.gmra.mrb[4].mxu1 %v617_v55 }
  0xc7   : > { %v221_v56 = vpop.xlane.xlu0 %220 }
  0xc8   : > { %v243_v61 = vmax.f32 %v221_v56, 1.0 }
  0xca   : > { %v227_v57 = vpop.xlane.xlu1 %226  ;;  %761 = vrsqrt.f32 %v243_v61 }
  0xcb   : > { %v224_v58 = vpop.xlane.xlu0 %223  ;;  %v245_v5 = vmax.f32 %v227_v57, 1.0 }
  0xcc   : > { %v244_v0 = vmax.f32 %v224_v58, 1.0 }
  0xce   : > { %v230_v59 = vpop.xlane.xlu1 %229 }
  0xcf   : > { %v233_v60 = vpop.xlane.xlu0 %232  ;;  %v246_v7 = vmax.f32 %v230_v59, 1.0 }
  0xd0   : > { %v247_v63 = vmax.f32 %v233_v60, 1.0 }
  0xd2   : > { %v236_v62 = vpop.xlane.xlu1 %235  ;;  %763 = vrsqrt.f32 %v247_v63 }
  0xd3   : > { %v248_v1 = vmax.f32 %v236_v62, 1.0  ;;  %765 = vrsqrt.f32 %v244_v0  ;;  %v239_v2 = vpop.xlane.xlu0 %238 }
  0xd4   : > { %v249_v4 = vmax.f32 %v239_v2, 1.0  ;;  %v762_v8 = vpop.eup %761 }
  0xd5   : > { %767 = vrsqrt.f32 %v248_v1 }
  0xd6   : > { %v242_v3 = vpop.xlane.xlu1 %241  ;;  %769 = vrsqrt.f32 %v249_v4 }
  0xd7   : > { %v250_v6 = vmax.f32 %v242_v3, 1.0  ;;  %771 = vrsqrt.f32 %v245_v5 }
  0xd9   : > { %773 = vrsqrt.f32 %v250_v6 }
  0xda   : > { %775 = vrsqrt.f32 %v246_v7 }
  0xdc   : > { %v764_v11 = vpop.eup %763 }
  0xdd   : > { %v766_v14 = vpop.eup %765 }
  0xdf   : > { %v768_v19 = vpop.eup %767 }
  0xe0   : > { %v770_v37 = vpop.eup %769 }
  0xe1   : > { %v772_v40 = vpop.eup %771 }
  0xe3   : > { %v774_v47 = vpop.eup %773 }
  0xe4   : > { %v776_v54 = vpop.eup %775 }
 0x125   : > { %v668_v9 = vpop.f32.mrb[0].mxu1  ;;  %v656_v10 = vpop.f32.mrb[0].mxu0 }
 0x126   : > { %v657_v12 = vpop.f32.mrb[1].mxu0  ;;  %v669_v13 = vpop.f32.mrb[1].mxu1 }
 0x127   : > { %v658_v15 = vadd.f32 %v657_v12, %v656_v10  ;;  %v670_v16 = vadd.f32 %v669_v13, %v668_v9  ;;  %v659_v17 = vpop.f32.mrb[2].mxu0  ;;  %v671_v18 = vpop.f32.mrb[2].mxu1 }
 0x128   : > { %v660_v21 = vpop.f32.mrb[3].mxu0  ;;  %v672_v22 = vpop.f32.mrb[3].mxu1 }
 0x129   : > { %v492_v23 = vmul.f32 %v762_v8, %v658_v15  ;;  %v496_v24 = vmul.f32 %v764_v11, %v670_v16  ;;  %v661_v25 = vadd.f32 %v660_v21, %v659_v17  ;;  %v673_v26 = vadd.f32 %v672_v22, %v671_v18 }
 0x12b   : > { %v507_v27 = vadd.f32 %v635_v20, %v492_v23  ;;  %v511_v28 = vadd.f32 %v635_v20, %v496_v24  ;;  %v493_v29 = vmul.f32 %v766_v14, %v661_v25  ;;  %v497_v30 = vmul.f32 %v768_v19, %v673_v26 }
 0x12d   : > { %v515_v31 = vmax.f32 %v507_v27, 0.0  ;;  %v519_v32 = vmax.f32 %v511_v28, 0.0  ;;  %v508_v33 = vadd.f32 %v635_v20, %v493_v29  ;;  %v512_v34 = vadd.f32 %v635_v20, %v497_v30  ;;  %v662_v35 = vpop.f32.mrb[4].mxu0  ;;  %v674_v36 = vpop.f32.mrb[4].mxu1 }
 0x12e   : > { %v663_v38 = vpop.f32.mrb[5].mxu0  ;;  %v675_v39 = vpop.f32.mrb[5].mxu1 }
 0x12f   : > { %524 = vst.msk [vmem:[%s1045_s22] sm:$0xff] %vm523_vm0, %v515_v31  ;;  %528 = vst.msk [vmem:[%s1045_s22 + $0x20] sm:$0xff] %vm523_vm0, %v519_v32  ;;  %v516_v41 = vmax.f32 %v508_v33, 0.0  ;;  %v520_v42 = vmax.f32 %v512_v34, 0.0  ;;  %v664_v43 = vadd.f32 %v663_v38, %v662_v35  ;;  %v676_v44 = vadd.f32 %v675_v39, %v674_v36  ;;  %v665_v45 = vpop.f32.mrb[6].mxu0  ;;  %v677_v46 = vpop.f32.mrb[6].mxu1 }
 0x130   : > { %v666_v48 = vpop.f32.mrb[7].mxu0  ;;  %v678_v49 = vpop.f32.mrb[7].mxu1 }
 0x131   : > { %525 = vst.msk [vmem:[%s1045_s22 + $0x8] sm:$0xff] %vm523_vm0, %v516_v41  ;;  %529 = vst.msk [vmem:[%s1045_s22 + $0x28] sm:$0xff] %vm523_vm0, %v520_v42  ;;  %v494_v50 = vmul.f32 %v772_v40, %v664_v43  ;;  %v498_v51 = vmul.f32 %v770_v37, %v676_v44  ;;  %v667_v52 = vadd.f32 %v666_v48, %v665_v45 }
 0x132   : > { %v679_v53 = vadd.f32 %v678_v49, %v677_v46 }
 0x133   : > { %v509_v55 = vadd.f32 %v635_v20, %v494_v50  ;;  %v513_v56 = vadd.f32 %v635_v20, %v498_v51  ;;  %v495_v57 = vmul.f32 %v776_v54, %v667_v52 }
 0x134   : > { %v499_v58 = vmul.f32 %v774_v47, %v679_v53 }
 0x135   : > { %v517_v59 = vmax.f32 %v509_v55, 0.0  ;;  %v521_v60 = vmax.f32 %v513_v56, 0.0  ;;  %v510_v61 = vadd.f32 %v635_v20, %v495_v57 }
 0x136   : > { %v514_v62 = vadd.f32 %v635_v20, %v499_v58 }
 0x137   : > { %526 = vst.msk [vmem:[%s1045_s22 + $0x10] sm:$0xff] %vm523_vm0, %v517_v59  ;;  %530 = vst.msk [vmem:[%s1045_s22 + $0x30] sm:$0xff] %vm523_vm0, %v521_v60  ;;  %v518_v63 = vmax.f32 %v510_v61, 0.0 }
 0x138   : > { %v522_v0 = vmax.f32 %v514_v62, 0.0 }
 0x139   : > { %527 = vst.msk [vmem:[%s1045_s22 + $0x18] sm:$0xff] %vm523_vm0, %v518_v63 }
 0x13a   : > { %531 = vst.msk [vmem:[%s1045_s22 + $0x38] sm:$0xff] %vm523_vm0, %v522_v0 }
 0x13b PF: > { %p13_p8 = scmp.ge.s32.totalorder %s886_s17, 6   ;;  %s1083_s12 = smov %s833_s13 }
 0x13c   : > { %s1084_s13 = smov %s837_s14  ;;  %s1085_s14 = smov %s896_s20 }
 0x13d   : > { %s1086_s15 = smov %s886_s17  ;;  %15 = sbr.rel (!%p13_p8) target bundleno = 3 (0x3), region = 72 }
 0x144   :  { %554 = vsyncpa [#allocation3], 1 }
 0x145   :  { %556 = vsyncpa [#allocation3 + $0x1], 1 }

</bundles_post_ra>
